<compile_context>
chip_gen: v7x
topology: tpu7x:2x2x1
jax: 0.10.0
libtpu: 0.0.40
codegen_flags: <defaults>
</compile_context>

<pallas_src>
import functools

import jax
import jax.numpy as jnp
from jax import lax
from jax.experimental import pallas as pl
from jax.experimental.pallas import tpu as pltpu

LANES = 128
MAX_TILE_ROWS = 8192                     # 4 MiB f32 per input buffer
VMEM_LIMIT_BYTES = 32 * 1024 * 1024      # explicit scoped-VMEM limit, safe on v5e/v6e/v7x


def _round_up(x, m):
    return ((x + m - 1) // m) * m


def _sublane_multiple(dtype):
    # f32 -> 8 sublanes, bf16 -> 16, int8/fp8 -> 32 (packed-tiling constraint).
    return max(8, 32 // max(1, jnp.dtype(dtype).itemsize))


def _num_tensorcores():
    """Best-effort TensorCore count per chip; falls back to 2 (cheap on 1-TC chips)."""
    try:
        info = pltpu.get_tpu_info()
    except Exception:
        info = None
    if info is not None:
        for attr in ("num_cores", "num_tensorcores", "tensorcore_count",
                     "cores_per_chip", "core_count"):
            v = getattr(info, attr, None)
            if isinstance(v, int) and v > 0:
                return v
    try:
        v = getattr(jax.devices()[0], "num_cores", None)
        if isinstance(v, int) and v > 0:
            return v
    except Exception:
        pass
    return 2


def _dice_kernel(p_ref, t_ref, out_ref, acc_i, acc_p, acc_t,
                 *, rows, tile_rows, inner):
    pidx = pl.program_id(0)   # parallel split (megacore / both TCs)
    i = pl.program_id(1)      # sequential reduction axis

    @pl.when(i == 0)
    def _():
        acc_i[...] = jnp.zeros_like(acc_i)
        acc_p[...] = jnp.zeros_like(acc_p)
        acc_t[...] = jnp.zeros_like(acc_t)

    # Unclamped global row offset of this tile. Tiles fully inside [0, rows) take the unmasked
    # fast path; the last (possibly partial) tile and clamped duplicates take the masked path.
    row0 = (pidx * inner + i) * tile_rows
    full_tile = row0 + tile_rows <= rows

    p = p_ref[...]                                          # native dtype tiles
    t = t_ref[...]

    @pl.when(full_tile)
    def _():
        pred_f = (p > 0.5).astype(jnp.float32)
        inter_f = jnp.where(t != 0, pred_f, 0.0)
        t_f = t.astype(jnp.float32)
        # Pre-reduce the tile to (8, 128) (pure VPU adds; no cross-lane work), then one small
        # accumulator read-modify-write per tile instead of per vreg.
        acc_i[...] += inter_f.reshape(-1, 8, LANES).sum(axis=0)
        acc_p[...] += pred_f.reshape(-1, 8, LANES).sum(axis=0)
        acc_t[...] += t_f.reshape(-1, 8, LANES).sum(axis=0)

    @pl.when(jnp.logical_not(full_tile))
    def _():
        row_ids = row0 + lax.broadcasted_iota(jnp.int32, (tile_rows, 1), 0)
        mask = row_ids < rows                               # (tile_rows, 1) -> lane-broadcast
        pred = jnp.logical_and(p > 0.5, mask)
        targ = jnp.logical_and(t != 0, mask)
        pred_f = pred.astype(jnp.float32)
        inter_f = jnp.where(targ, pred_f, 0.0)
        # Select (not mul) so OOB garbage/NaN in padded rows is dropped.
        t_f = jnp.where(mask, t.astype(jnp.float32), 0.0)
        acc_i[...] += inter_f.reshape(-1, 8, LANES).sum(axis=0)
        acc_p[...] += pred_f.reshape(-1, 8, LANES).sum(axis=0)
        acc_t[...] += t_f.reshape(-1, 8, LANES).sum(axis=0)

    @pl.when(i == inner - 1)
    def _():
        out_ref[0, 0] = acc_i[...]
        out_ref[0, 1] = acc_p[...]
        out_ref[0, 2] = acc_t[...]


def dice_coefficient(prediction, target):
    """Pallas TPU implementation of DiceCoefficient.forward (eps unused, as in the module)."""
    p_flat = prediction.reshape(-1)
    t_flat = target.reshape(-1)
    n = p_flat.shape[0]

    n_bulk = (n // LANES) * LANES          # lane-exact prefix handled by the kernel (no pad copy)
    inter = jnp.float32(0.0)
    psum = jnp.float32(0.0)
    tsum = jnp.float32(0.0)

    if n_bulk:
        rows = n_bulk // LANES
        row_align = max(_sublane_multiple(p_flat.dtype), _sublane_multiple(t_flat.dtype))
        tile_rows = min(MAX_TILE_ROWS, _round_up(rows, row_align))
        nblocks = pl.cdiv(rows, tile_rows)
        P = max(1, min(_num_tensorcores(), nblocks))
        inner = pl.cdiv(nblocks, P)

        p2d = p_flat[:n_bulk].reshape(rows, LANES)
        t2d = t_flat[:n_bulk].reshape(rows, LANES)

        def in_map(p, i):
            # Clamp so a core that runs out of real tiles re-reads the last one;
            # the in-kernel row mask zeroes its contribution.
            return (jnp.minimum(p * inner + i, nblocks - 1), 0)

        def out_map(p, i):
            return (p, 0, 0, 0)

        kernel = functools.partial(_dice_kernel, rows=rows,
                                   tile_rows=tile_rows, inner=inner)

        out = pl.pallas_call(
            kernel,
            out_shape=jax.ShapeDtypeStruct((P, 3, 8, LANES), jnp.float32),
            grid_spec=pltpu.PrefetchScalarGridSpec(
                num_scalar_prefetch=0,
                grid=(P, inner),
                in_specs=[
                    pl.BlockSpec((tile_rows, LANES), in_map),
                    pl.BlockSpec((tile_rows, LANES), in_map),
                ],
                out_specs=pl.BlockSpec((1, 3, 8, LANES), out_map),
                scratch_shapes=[
                    pltpu.VMEM((8, LANES), jnp.float32),
                    pltpu.VMEM((8, LANES), jnp.float32),
                    pltpu.VMEM((8, LANES), jnp.float32),
                ],
            ),
            compiler_params=pltpu.CompilerParams(
                dimension_semantics=("parallel", "arbitrary"),
                vmem_limit_bytes=VMEM_LIMIT_BYTES,
            ),
        )(p2d, t2d)

        sums = jnp.sum(out, axis=(0, 2, 3))          # (3,) — one tiny wrapper reduction
        inter = inter + sums[0]
        psum = psum + sums[1]
        tsum = tsum + sums[2]

    tail = n - n_bulk
    if tail:
        # <128 leftover elements: trivial plain-JAX epilogue instead of padding the whole input.
        pt = p_flat[n_bulk:]
        tt = t_flat[n_bulk:]
        pred_t = pt > 0.5
        inter = inter + jnp.sum(jnp.logical_and(pred_t, tt != 0).astype(jnp.float32))
        psum = psum + jnp.sum(pred_t.astype(jnp.float32))
        tsum = tsum + jnp.sum(tt.astype(jnp.float32))

    return (2.0 * inter) / (psum + tsum)


def _reference(prediction, target):
    pred_bool = prediction > 0.5
    targ_bool = target != 0
    intersection = jnp.sum(jnp.logical_and(pred_bool, targ_bool).astype(jnp.float32))
    numerator = 2.0 * intersection
    denominator = jnp.sum(pred_bool.astype(jnp.float32)) + jnp.sum(target.astype(jnp.float32))
    return numerator / denominator


if __name__ == "__main__":
    key = jax.random.PRNGKey(0)
    k1, k2 = jax.random.split(key)

    # Small 3D segmentation shapes: [N, C, D, H, W]
    shape = (2, 1, 8, 16, 16)
    prediction = jax.random.uniform(k1, shape, dtype=jnp.float32)        # probabilities in [0, 1)
    target = (jax.random.uniform(k2, shape) > 0.5).astype(jnp.float32)   # binary mask

    result = jax.block_until_ready(dice_coefficient(prediction, target))
    ref = jax.block_until_ready(_reference(prediction, target))
    assert jnp.allclose(result, ref, rtol=1e-5, atol=1e-6), (result, ref)

    print("KERNEL_OK")
</pallas_src>

<mosaic_0001>
module attributes {stable_mosaic.version = 11 : i64} {
  func.func @_dice_kernel(%arg0: i32, %arg1: i32, %arg2: memref<32x128xf32, #tpu.memory_space<vmem>>, %arg3: memref<32x128xf32, #tpu.memory_space<vmem>>, %arg4: memref<1x3x8x128xf32, #tpu.memory_space<vmem>>, %arg5: memref<8x128xf32, #tpu.memory_space<vmem>>, %arg6: memref<8x128xf32, #tpu.memory_space<vmem>>, %arg7: memref<8x128xf32, #tpu.memory_space<vmem>>) attributes {dimension_semantics = [#tpu.dimension_semantics<parallel>, #tpu.dimension_semantics<arbitrary>], iteration_bounds = array<i64: 1, 1>, scalar_prefetch = 0 : i64, scratch_operands = 3 : i64, tpu.core_type = #tpu.core_type<tc>, window_params = [{transform_indices = @transform_0, window_bounds = array<i64: 32, 128>}, {transform_indices = @transform_1, window_bounds = array<i64: 32, 128>}, {transform_indices = @transform_2, window_bounds = array<i64: 1, 3, 8, 128>}]} {
    %c0_i32 = arith.constant 0 : i32
    %0 = arith.cmpi eq, %arg1, %c0_i32 : i32
    %1 = arith.extui %0 : i1 to i32
    %c0_i32_0 = arith.constant 0 : i32
    %2 = arith.cmpi ne, %1, %c0_i32_0 : i32
    scf.if %2 {
      %cst = arith.constant 0.000000e+00 : f32
      %18 = vector.broadcast %cst : f32 to vector<8x128xf32>
      %c0_10 = arith.constant 0 : index
      %c0_11 = arith.constant 0 : index
      %19 = vector.load %arg5[%c0_10, %c0_11] : memref<8x128xf32, #tpu.memory_space<vmem>>, vector<8x128xf32>
      tpu.vector_store %arg5[%c0_10, %c0_11], %18 {strides = array<i32>} : memref<8x128xf32, #tpu.memory_space<vmem>>, vector<8x128xf32>,
      %cst_12 = arith.constant 0.000000e+00 : f32
      %20 = vector.broadcast %cst_12 : f32 to vector<8x128xf32>
      %c0_13 = arith.constant 0 : index
      %c0_14 = arith.constant 0 : index
      %21 = vector.load %arg6[%c0_13, %c0_14] : memref<8x128xf32, #tpu.memory_space<vmem>>, vector<8x128xf32>
      tpu.vector_store %arg6[%c0_13, %c0_14], %20 {strides = array<i32>} : memref<8x128xf32, #tpu.memory_space<vmem>>, vector<8x128xf32>,
      %cst_15 = arith.constant 0.000000e+00 : f32
      %22 = vector.broadcast %cst_15 : f32 to vector<8x128xf32>
      %c0_16 = arith.constant 0 : index
      %c0_17 = arith.constant 0 : index
      %23 = vector.load %arg7[%c0_16, %c0_17] : memref<8x128xf32, #tpu.memory_space<vmem>>, vector<8x128xf32>
      tpu.vector_store %arg7[%c0_16, %c0_17], %22 {strides = array<i32>} : memref<8x128xf32, #tpu.memory_space<vmem>>, vector<8x128xf32>,
    } else {
    }
    %c1_i32 = arith.constant 1 : i32
    %3 = arith.muli %arg0, %c1_i32 : i32
    %4 = arith.addi %3, %arg1 : i32
    %c32_i32 = arith.constant 32 : i32
    %5 = arith.muli %4, %c32_i32 : i32
    %c32_i32_1 = arith.constant 32 : i32
    %6 = arith.addi %5, %c32_i32_1 : i32
    %c32_i32_2 = arith.constant 32 : i32
    %7 = arith.cmpi sle, %6, %c32_i32_2 : i32
    %c0 = arith.constant 0 : index
    %c0_3 = arith.constant 0 : index
    %8 = vector.load %arg2[%c0, %c0_3] : memref<32x128xf32, #tpu.memory_space<vmem>>, vector<32x128xf32>
    %c0_4 = arith.constant 0 : index
    %c0_5 = arith.constant 0 : index
    %9 = vector.load %arg3[%c0_4, %c0_5] : memref<32x128xf32, #tpu.memory_space<vmem>>, vector<32x128xf32>
    %10 = arith.extui %7 : i1 to i32
    %c0_i32_6 = arith.constant 0 : i32
    %11 = arith.cmpi ne, %10, %c0_i32_6 : i32
    scf.if %11 {
      %cst = arith.constant 5.000000e-01 : f32
      %18 = vector.broadcast %cst : f32 to vector<32x128xf32>
      %19 = arith.cmpf ogt, %8, %18 : vector<32x128xf32>
      %20 = arith.extui %19 : vector<32x128xi1> to vector<32x128xi32>
      %21 = arith.sitofp %20 : vector<32x128xi32> to vector<32x128xf32>
      %cst_10 = arith.constant 0.000000e+00 : f32
      %22 = vector.broadcast %cst_10 : f32 to vector<32x128xf32>
      %23 = arith.cmpf one, %9, %22 : vector<32x128xf32>
      %cst_11 = arith.constant 0.000000e+00 : f32
      %24 = vector.broadcast %cst_11 : f32 to vector<32x128xf32>
      %25 = arith.select %23, %21, %24 : vector<32x128xi1>, vector<32x128xf32>
      %c0_12 = arith.constant 0 : index
      %c0_13 = arith.constant 0 : index
      %26 = vector.load %arg5[%c0_12, %c0_13] : memref<8x128xf32, #tpu.memory_space<vmem>>, vector<8x128xf32>
      %27 = vector.shape_cast %25 : vector<32x128xf32> to vector<4x8x128xf32>
      %cst_14 = arith.constant dense<0.000000e+00> : vector<8x128xf32>
      %28 = vector.multi_reduction <add>, %27, %cst_14 [0] : vector<4x8x128xf32> to vector<8x128xf32>
      %29 = arith.addf %26, %28 : vector<8x128xf32>
      %c0_15 = arith.constant 0 : index
      %c0_16 = arith.constant 0 : index
      %30 = vector.load %arg5[%c0_15, %c0_16] : memref<8x128xf32, #tpu.memory_space<vmem>>, vector<8x128xf32>
      tpu.vector_store %arg5[%c0_15, %c0_16], %29 {strides = array<i32>} : memref<8x128xf32, #tpu.memory_space<vmem>>, vector<8x128xf32>,
      %c0_17 = arith.constant 0 : index
      %c0_18 = arith.constant 0 : index
      %31 = vector.load %arg6[%c0_17, %c0_18] : memref<8x128xf32, #tpu.memory_space<vmem>>, vector<8x128xf32>
      %32 = vector.shape_cast %21 : vector<32x128xf32> to vector<4x8x128xf32>
      %cst_19 = arith.constant dense<0.000000e+00> : vector<8x128xf32>
      %33 = vector.multi_reduction <add>, %32, %cst_19 [0] : vector<4x8x128xf32> to vector<8x128xf32>
      %34 = arith.addf %31, %33 : vector<8x128xf32>
      %c0_20 = arith.constant 0 : index
      %c0_21 = arith.constant 0 : index
      %35 = vector.load %arg6[%c0_20, %c0_21] : memref<8x128xf32, #tpu.memory_space<vmem>>, vector<8x128xf32>
      tpu.vector_store %arg6[%c0_20, %c0_21], %34 {strides = array<i32>} : memref<8x128xf32, #tpu.memory_space<vmem>>, vector<8x128xf32>,
      %c0_22 = arith.constant 0 : index
      %c0_23 = arith.constant 0 : index
      %36 = vector.load %arg7[%c0_22, %c0_23] : memref<8x128xf32, #tpu.memory_space<vmem>>, vector<8x128xf32>
      %37 = vector.shape_cast %9 : vector<32x128xf32> to vector<4x8x128xf32>
      %cst_24 = arith.constant dense<0.000000e+00> : vector<8x128xf32>
      %38 = vector.multi_reduction <add>, %37, %cst_24 [0] : vector<4x8x128xf32> to vector<8x128xf32>
      %39 = arith.addf %36, %38 : vector<8x128xf32>
      %c0_25 = arith.constant 0 : index
      %c0_26 = arith.constant 0 : index
      %40 = vector.load %arg7[%c0_25, %c0_26] : memref<8x128xf32, #tpu.memory_space<vmem>>, vector<8x128xf32>
      tpu.vector_store %arg7[%c0_25, %c0_26], %39 {strides = array<i32>} : memref<8x128xf32, #tpu.memory_space<vmem>>, vector<8x128xf32>,
    } else {
    }
    %true = arith.constant true
    %12 = arith.xori %7, %true : i1
    %13 = arith.extui %12 : i1 to i32
    %c0_i32_7 = arith.constant 0 : i32
    %14 = arith.cmpi ne, %13, %c0_i32_7 : i32
    scf.if %14 {
      %18 = tpu.iota {dimensions = array<i32: 0>} : vector<32x1xi32>
      %19 = vector.broadcast %5 : i32 to vector<32x1xi32>
      %20 = arith.addi %19, %18 : vector<32x1xi32>
      %c32_i32_10 = arith.constant 32 : i32
      %21 = vector.broadcast %c32_i32_10 : i32 to vector<32x1xi32>
      %22 = arith.cmpi slt, %20, %21 : vector<32x1xi32>
      %cst = arith.constant 5.000000e-01 : f32
      %23 = vector.broadcast %cst : f32 to vector<32x128xf32>
      %24 = arith.cmpf ogt, %8, %23 : vector<32x128xf32>
      %25 = vector.broadcast %22 : vector<32x1xi1> to vector<32x128xi1>
      %26 = arith.andi %24, %25 : vector<32x128xi1>
      %cst_11 = arith.constant 0.000000e+00 : f32
      %27 = vector.broadcast %cst_11 : f32 to vector<32x128xf32>
      %28 = arith.cmpf one, %9, %27 : vector<32x128xf32>
      %29 = vector.broadcast %22 : vector<32x1xi1> to vector<32x128xi1>
      %30 = arith.andi %28, %29 : vector<32x128xi1>
      %31 = arith.extui %26 : vector<32x128xi1> to vector<32x128xi32>
      %32 = arith.sitofp %31 : vector<32x128xi32> to vector<32x128xf32>
      %cst_12 = arith.constant 0.000000e+00 : f32
      %33 = vector.broadcast %cst_12 : f32 to vector<32x128xf32>
      %34 = arith.select %30, %32, %33 : vector<32x128xi1>, vector<32x128xf32>
      %cst_13 = arith.constant 0.000000e+00 : f32
      %35 = vector.shape_cast %22 : vector<32x1xi1> to vector<32x1xi1>
      %36 = vector.broadcast %35 : vector<32x1xi1> to vector<32x128xi1>
      %37 = vector.broadcast %cst_13 : f32 to vector<32x128xf32>
      %38 = arith.select %36, %9, %37 : vector<32x128xi1>, vector<32x128xf32>
      %c0_14 = arith.constant 0 : index
      %c0_15 = arith.constant 0 : index
      %39 = vector.load %arg5[%c0_14, %c0_15] : memref<8x128xf32, #tpu.memory_space<vmem>>, vector<8x128xf32>
      %40 = vector.shape_cast %34 : vector<32x128xf32> to vector<4x8x128xf32>
      %cst_16 = arith.constant dense<0.000000e+00> : vector<8x128xf32>
      %41 = vector.multi_reduction <add>, %40, %cst_16 [0] : vector<4x8x128xf32> to vector<8x128xf32>
      %42 = arith.addf %39, %41 : vector<8x128xf32>
      %c0_17 = arith.constant 0 : index
      %c0_18 = arith.constant 0 : index
      %43 = vector.load %arg5[%c0_17, %c0_18] : memref<8x128xf32, #tpu.memory_space<vmem>>, vector<8x128xf32>
      tpu.vector_store %arg5[%c0_17, %c0_18], %42 {strides = array<i32>} : memref<8x128xf32, #tpu.memory_space<vmem>>, vector<8x128xf32>,
      %c0_19 = arith.constant 0 : index
      %c0_20 = arith.constant 0 : index
      %44 = vector.load %arg6[%c0_19, %c0_20] : memref<8x128xf32, #tpu.memory_space<vmem>>, vector<8x128xf32>
      %45 = vector.shape_cast %32 : vector<32x128xf32> to vector<4x8x128xf32>
      %cst_21 = arith.constant dense<0.000000e+00> : vector<8x128xf32>
      %46 = vector.multi_reduction <add>, %45, %cst_21 [0] : vector<4x8x128xf32> to vector<8x128xf32>
      %47 = arith.addf %44, %46 : vector<8x128xf32>
      %c0_22 = arith.constant 0 : index
      %c0_23 = arith.constant 0 : index
      %48 = vector.load %arg6[%c0_22, %c0_23] : memref<8x128xf32, #tpu.memory_space<vmem>>, vector<8x128xf32>
      tpu.vector_store %arg6[%c0_22, %c0_23], %47 {strides = array<i32>} : memref<8x128xf32, #tpu.memory_space<vmem>>, vector<8x128xf32>,
      %c0_24 = arith.constant 0 : index
      %c0_25 = arith.constant 0 : index
      %49 = vector.load %arg7[%c0_24, %c0_25] : memref<8x128xf32, #tpu.memory_space<vmem>>, vector<8x128xf32>
      %50 = vector.shape_cast %38 : vector<32x128xf32> to vector<4x8x128xf32>
      %cst_26 = arith.constant dense<0.000000e+00> : vector<8x128xf32>
      %51 = vector.multi_reduction <add>, %50, %cst_26 [0] : vector<4x8x128xf32> to vector<8x128xf32>
      %52 = arith.addf %49, %51 : vector<8x128xf32>
      %c0_27 = arith.constant 0 : index
      %c0_28 = arith.constant 0 : index
      %53 = vector.load %arg7[%c0_27, %c0_28] : memref<8x128xf32, #tpu.memory_space<vmem>>, vector<8x128xf32>
      tpu.vector_store %arg7[%c0_27, %c0_28], %52 {strides = array<i32>} : memref<8x128xf32, #tpu.memory_space<vmem>>, vector<8x128xf32>,
    } else {
    }
    %c0_i32_8 = arith.constant 0 : i32
    %15 = arith.cmpi eq, %arg1, %c0_i32_8 : i32
    %16 = arith.extui %15 : i1 to i32
    %c0_i32_9 = arith.constant 0 : i32
    %17 = arith.cmpi ne, %16, %c0_i32_9 : i32
    scf.if %17 {
      %c0_10 = arith.constant 0 : index
      %c0_11 = arith.constant 0 : index
      %18 = vector.load %arg5[%c0_10, %c0_11] : memref<8x128xf32, #tpu.memory_space<vmem>>, vector<8x128xf32>
      %c0_12 = arith.constant 0 : index
      %c0_13 = arith.constant 0 : index
      %c0_14 = arith.constant 0 : index
      %c0_15 = arith.constant 0 : index
      %19 = vector.load %arg4[%c0_12, %c0_13, %c0_14, %c0_15] : memref<1x3x8x128xf32, #tpu.memory_space<vmem>>, vector<1x1x8x128xf32>
      %20 = vector.shape_cast %19 : vector<1x1x8x128xf32> to vector<8x128xf32>
      %21 = vector.shape_cast %18 : vector<8x128xf32> to vector<1x1x8x128xf32>
      tpu.vector_store %arg4[%c0_12, %c0_13, %c0_14, %c0_15], %21 {strides = array<i32>} : memref<1x3x8x128xf32, #tpu.memory_space<vmem>>, vector<1x1x8x128xf32>,
      %c0_16 = arith.constant 0 : index
      %c0_17 = arith.constant 0 : index
      %22 = vector.load %arg6[%c0_16, %c0_17] : memref<8x128xf32, #tpu.memory_space<vmem>>, vector<8x128xf32>
      %c0_18 = arith.constant 0 : index
      %c1 = arith.constant 1 : index
      %c0_19 = arith.constant 0 : index
      %c0_20 = arith.constant 0 : index
      %23 = vector.load %arg4[%c0_18, %c1, %c0_19, %c0_20] : memref<1x3x8x128xf32, #tpu.memory_space<vmem>>, vector<1x1x8x128xf32>
      %24 = vector.shape_cast %23 : vector<1x1x8x128xf32> to vector<8x128xf32>
      %25 = vector.shape_cast %22 : vector<8x128xf32> to vector<1x1x8x128xf32>
      tpu.vector_store %arg4[%c0_18, %c1, %c0_19, %c0_20], %25 {strides = array<i32>} : memref<1x3x8x128xf32, #tpu.memory_space<vmem>>, vector<1x1x8x128xf32>,
      %c0_21 = arith.constant 0 : index
      %c0_22 = arith.constant 0 : index
      %26 = vector.load %arg7[%c0_21, %c0_22] : memref<8x128xf32, #tpu.memory_space<vmem>>, vector<8x128xf32>
      %c0_23 = arith.constant 0 : index
      %c2 = arith.constant 2 : index
      %c0_24 = arith.constant 0 : index
      %c0_25 = arith.constant 0 : index
      %27 = vector.load %arg4[%c0_23, %c2, %c0_24, %c0_25] : memref<1x3x8x128xf32, #tpu.memory_space<vmem>>, vector<1x1x8x128xf32>
      %28 = vector.shape_cast %27 : vector<1x1x8x128xf32> to vector<8x128xf32>
      %29 = vector.shape_cast %26 : vector<8x128xf32> to vector<1x1x8x128xf32>
      tpu.vector_store %arg4[%c0_23, %c2, %c0_24, %c0_25], %29 {strides = array<i32>} : memref<1x3x8x128xf32, #tpu.memory_space<vmem>>, vector<1x1x8x128xf32>,
    } else {
    }
    return
  }
  func.func @transform_0(%arg0: i32, %arg1: i32) -> (i32, i32) {
    %c1_i32 = arith.constant 1 : i32
    %0 = arith.muli %arg0, %c1_i32 : i32
    %1 = arith.addi %0, %arg1 : i32
    %c0_i32 = arith.constant 0 : i32
    %2 = arith.minsi %1, %c0_i32 : i32
    %c0_i32_0 = arith.constant 0 : i32
    %c0_i32_1 = arith.constant 0 : i32
    return %2, %c0_i32_0 : i32, i32
  }
  func.func @transform_1(%arg0: i32, %arg1: i32) -> (i32, i32) {
    %c1_i32 = arith.constant 1 : i32
    %0 = arith.muli %arg0, %c1_i32 : i32
    %1 = arith.addi %0, %arg1 : i32
    %c0_i32 = arith.constant 0 : i32
    %2 = arith.minsi %1, %c0_i32 : i32
    %c0_i32_0 = arith.constant 0 : i32
    %c0_i32_1 = arith.constant 0 : i32
    return %2, %c0_i32_0 : i32, i32
  }
  func.func @transform_2(%arg0: i32, %arg1: i32) -> (i32, i32, i32, i32) {
    %c0_i32 = arith.constant 0 : i32
    %c0_i32_0 = arith.constant 0 : i32
    %c0_i32_1 = arith.constant 0 : i32
    %c0_i32_2 = arith.constant 0 : i32
    return %arg0, %c0_i32, %c0_i32_0, %c0_i32_1 : i32, i32, i32, i32
  }
}

</mosaic_0001>

<bundles_post_ra>
// kernel: tpu_custom_call.1
= control target key start
LH: loop header
LB: loop body
LE: loop exit
PB: predicated region body
PF: predicated region fallthrough
CT: control target
= control target key end

     0   :  { %7 = vsyncpa [#allocation6], 0  ;;  %s381_s0 = inlined_call_operand.hbm [shape: f32[32,128], index: 0, kind: input, shape index: {}]   ;;  %s382_s1 = inlined_call_operand.hbm [shape: f32[32,128], index: 1, kind: input, shape index: {}]   ;;  %s383_s2 = inlined_call_operand.hbm [shape: f32[1,3,8,128], index: 2, kind: output, shape index: {}]  }
   0x1   :  { %8 = vsyncpa [#allocation9], 0 }
   0x2   :  { %9 = vsyncpa [#allocation7], 0  ;;  %s315_s9 = smov [#allocation5]   ;;  %s243_s13 = scalar_lea.hbm %s381_s0, 512 }
   0x3   :  { %s21_s10 = sshll.u32 %s315_s9, 4  ;;  %p244_p0 = scmp.ne.s32.totalorder %s381_s0, %s243_s13  ;;  %s22_s10 = int_to_ptr.vmem [resolvable:$true] %s21_s10 }
   0x4   :  { %p247_p1 = scmp.lt.u32.totalorder %s243_s13, %s381_s0 }
   0x6   :  { %p249_p2 = pnand %p247_p1, %p244_p0 }
   0x8   :  { %252 = shalt.err (!%p249_p2)
}
   0x9   :  { %s253_s18 = scalar_lea.vmem %s22_s10, 512  ;;  %p258_p4 = scmp.lt.s32.totalorder %s22_s10, %s22_s10 }
   0xa   :  { %p254_p3 = scmp.ne.s32.totalorder %s22_s10, %s253_s18  ;;  %p259_p5 = scmp.lt.s32.totalorder %s253_s18, %s253_s18 }
   0xc   :  { %p260_p6 = por %p259_p5, %p258_p4 }
   0xe   :  { %p261_p7 = pnand %p260_p6, %p254_p3 }
  0x10   :  { %264 = shalt.err (!%p261_p7)
}
  0x11   :  { %s316_s19 = smov 128   ;;  %s317_s20 = smov 8  }
  0x12   :  { %27 = dma.hbm_to_vmem [thread:$0]  %s381_s0, 512, %s22_s10, [#allocation6], %s316_s19, %s316_s19, %s317_s20  }
  0x13   :  { %s318_s23 = smov [#allocation8]   ;;  %s265_s27 = scalar_lea.hbm %s382_s1, 512 }
  0x14   :  { %s39_s24 = sshll.u32 %s318_s23, 4  ;;  %p266_p8 = scmp.ne.s32.totalorder %s382_s1, %s265_s27  ;;  %s40_s24 = int_to_ptr.vmem [resolvable:$true] %s39_s24 }
  0x15   :  { %p269_p9 = scmp.lt.u32.totalorder %s265_s27, %s382_s1 }
  0x17   :  { %p271_p10 = pnand %p269_p9, %p266_p8 }
  0x19   :  { %274 = shalt.err (!%p271_p10)
}
  0x1a   :  { %s275_s4 = scalar_lea.vmem %s40_s24, 512  ;;  %p280_p12 = scmp.lt.s32.totalorder %s40_s24, %s40_s24 }
  0x1b   :  { %p276_p11 = scmp.ne.s32.totalorder %s40_s24, %s275_s4  ;;  %p281_p13 = scmp.lt.s32.totalorder %s275_s4, %s275_s4 }
  0x1d   :  { %p282_p0 = por %p281_p13, %p280_p12 }
  0x1f   :  { %p283_p1 = pnand %p282_p0, %p276_p11 }
  0x21   :  { %286 = shalt.err (!%p283_p1)
}
  0x22   :  { %45 = dma.hbm_to_vmem [thread:$0]  %s382_s1, 512, %s40_s24, [#allocation9], %s316_s19, %s316_s19, %s317_s20  }
  0x23   :  { %309 = dma.done.wait [#allocation6], 512  }
  0x24   :  { %310 = vsyncadd [#allocation6], 4294966784 }
  0x25   :  { %311 = dma.done.wait [#allocation9], 512  }
  0x26   :  { %312 = vsyncadd [#allocation9], 4294966784  ;;  %v71_v0 = vld [vmem:[#allocation5] sm:$0xff]  ;;  %v72_v1 = vld [vmem:[#allocation5 + $0x8] sm:$0xff]  ;;  %v319_v8 = vmov 0.0   ;;  %s320_s1 = smov [#allocation10]  }
  0x27   :  { %v73_v2 = vld [vmem:[#allocation5 + $0x10] sm:$0xff]  ;;  %v74_v3 = vld [vmem:[#allocation5 + $0x18] sm:$0xff]  ;;  %v75_v4 = vld [vmem:[#allocation8] sm:$0xff]  ;;  %vm82_vm0 = vcmp.gt.f32.partialorder %v71_v0, 0.5  ;;  %vm83_vm1 = vcmp.gt.f32.partialorder %v72_v1, 0.5  ;;  %s212_s6 = sshll.u32 %s320_s1, 4  ;;  %s213_s6 = int_to_ptr.vmem [resolvable:$true] %s212_s6 }
  0x28   :  { %v76_v5 = vld [vmem:[#allocation8 + $0x8] sm:$0xff]  ;;  %vm84_vm2 = vcmp.gt.f32.partialorder %v73_v2, 0.5  ;;  %v77_v6 = vld [vmem:[#allocation8 + $0x10] sm:$0xff]  ;;  %v78_v7 = vld [vmem:[#allocation8 + $0x18] sm:$0xff]  ;;  %vm85_vm3 = vcmp.gt.f32.partialorder %v74_v3, 0.5  ;;  %v229_v9 = vsel %vm82_vm0, 1.0, %v319_v8  ;;  %p292_p3 = scmp.lt.s32.totalorder %s213_s6, %s213_s6 }
  0x29   :  { %v230_v10 = vsel %vm83_vm1, 1.0, %v319_v8  ;;  %v231_v11 = vsel %vm84_vm2, 1.0, %v319_v8  ;;  %v232_v12 = vsel %vm85_vm3, 1.0, %v319_v8  ;;  %vm94_vm4 = vcmp.ne.f32.partialorder %v75_v4, 0.0  ;;  %s287_s7 = scalar_lea.vmem %s213_s6, 384 }
  0x2a   :  { %vm95_vm5 = vcmp.ne.f32.partialorder %v76_v5, 0.0  ;;  %vm96_vm6 = vcmp.ne.f32.partialorder %v77_v6, 0.0  ;;  %vm97_vm7 = vcmp.ne.f32.partialorder %v78_v7, 0.0  ;;  %v98_v13 = vsel %vm94_vm4, %v229_v9, 0.0  ;;  %p288_p2 = scmp.ne.s32.totalorder %s213_s6, %s287_s7  ;;  %p293_p4 = scmp.lt.s32.totalorder %s287_s7, %s287_s7 }
  0x2b   :  { %v99_v14 = vsel %vm95_vm5, %v230_v10, 0.0  ;;  %v100_v15 = vsel %vm96_vm6, %v231_v11, 0.0  ;;  %v109_v17 = vadd.f32 %v230_v10, %v229_v9  ;;  %v115_v18 = vadd.f32 %v76_v5, %v75_v4 }
  0x2c   :  { %v103_v16 = vadd.f32 %v99_v14, %v98_v13  ;;  %v101_v19 = vsel %vm97_vm7, %v232_v12, 0.0  ;;  %p294_p5 = por %p293_p4, %p292_p3 }
  0x2d   :  { %v110_v21 = vadd.f32 %v231_v11, %v109_v17  ;;  %v116_v22 = vadd.f32 %v115_v18, %v77_v6 }
  0x2e   :  { %v104_v20 = vadd.f32 %v103_v16, %v100_v15  ;;  %p295_p6 = pnand %p294_p5, %p288_p2 }
  0x2f   :  { %v111_v24 = vadd.f32 %v232_v12, %v110_v21  ;;  %v117_v25 = vadd.f32 %v116_v22, %v78_v7 }
  0x30   :  { %v105_v23 = vadd.f32 %v104_v20, %v101_v19 }
  0x31   :  { %203 = vst [vmem:[#allocation10 + $0x8] sm:$0xff] %v111_v24  ;;  %206 = vst [vmem:[#allocation10 + $0x10] sm:$0xff] %v117_v25 }
  0x32   :  { %200 = vst [vmem:[#allocation10] sm:$0xff] %v105_v23 }
  0x33   :  { %298 = shalt.err (!%p295_p6)
}
  0x34   :  { %s299_s10 = scalar_lea.hbm %s383_s2, 384 }
  0x35   :  { %p300_p7 = scmp.ne.s32.totalorder %s383_s2, %s299_s10  ;;  %p303_p8 = scmp.lt.u32.totalorder %s299_s10, %s383_s2 }
  0x37   :  { %p305_p9 = pnand %p303_p8, %p300_p7 }
  0x39   :  { %308 = shalt.err (!%p305_p9)
}
  0x3a   :  { %218 = dma.vmem_to_hbm [thread:$0]  %s213_s6, 384, %s383_s2, [#allocation7], %s316_s19, %s316_s19, %s317_s20  }
  0x3b   :  { %313 = dma.done.wait [#allocation7], 384  }
  0x3c   :  { %314 = vsyncadd [#allocation7], 4294966912 }
  0x3d   :  { %222 = vsyncpa [#allocation6], 1 }
  0x3e   :  { %223 = vsyncpa [#allocation9], 1 }
  0x3f   :  { %224 = vsyncpa [#allocation7], 1 }

</bundles_post_ra>
